<compile_context>
chip_gen: v7x
topology: tpu7x:2x2x1
jax: 0.10.0
libtpu: 0.0.40
codegen_flags: <defaults>
</compile_context>

<pallas_src>
import math
import functools

import jax
import jax.numpy as jnp
from jax.experimental import pallas as pl
from jax.experimental.pallas import tpu as pltpu


# ----------------------------------------------------------------------------
# Helpers: VMEM budgeting / tile selection
# ----------------------------------------------------------------------------
def _round_up(x, m):
    return ((x + m - 1) // m) * m


def _vmem_capacity_bytes():
    try:
        info = pltpu.get_tpu_info()
        cap = getattr(info, "vmem_capacity_bytes", None)
        if cap:
            return int(cap)
    except Exception:
        pass
    return 64 * 1024 * 1024  # conservative fallback (v7x per-TensorCore VMEM)


def _vmem_need(Hh, d_ext, d, TQ, TK):
    """Rough per-step VMEM footprint: 2x-buffered blocks + live intermediates."""
    q_blk = Hh * _round_up(d_ext, 16) * TQ * 2          # (h, d_ext, TQ) bf16
    k_blk = Hh * _round_up(TK, 16) * 128 * 2            # (h, TK, d_ext) bf16, lanes pad->128
    v_blk = Hh * _round_up(d, 16) * TK * 2              # (h, d, TK) bf16
    o_blk = Hh * _round_up(d, 16) * TQ * 2              # (h, d, TQ) bf16
    acc = Hh * _round_up(d, 8) * TQ * 4                 # f32 accumulator scratch
    sim = Hh * _round_up(TK, 8) * TQ * 4                # f32 simT slab
    attn = Hh * _round_up(TK, 16) * TQ * 2              # bf16 attnT slab
    return 2 * (q_blk + k_blk + v_blk + o_blk) + acc + sim + attn


def _choose_tile(Hh, d_ext, d, HW, vmem_cap):
    """Largest 128-multiple (query == key) tile fitting ~60% of device VMEM."""
    budget = int(vmem_cap * 0.6)
    hw128 = max(128, _round_up(HW, 128))
    for T in (512, 384, 256, 128):
        if T > hw128:
            continue
        if _vmem_need(Hh, d_ext, d, T, T) <= budget:
            return T
    return 128


# ----------------------------------------------------------------------------
# Pallas kernel: transposed absolute attention with key-tile accumulation
# ----------------------------------------------------------------------------
def _abs_attn_kernel(q_ref, k_ref, v_ref, o_ref, acc_ref):
    """One (batch, query-tile, key-tile) grid step, all heads batched.

    q_ref:   (1, h, d_ext, TQ) bf16  Q pre-scaled by 1/(sqrt(d)*temp); extra
                                     channel holds t/temp (threshold folded).
    k_ref:   (1, h, TK, d_ext) bf16  K channels; extra channel is constant -1.
    v_ref:   (1, h, d, TK)     bf16
    o_ref:   (1, h, d, TQ)     bf16  written on the last key tile only.
    acc_ref: (h, d, TQ)        f32   accumulator across key tiles.
    """
    ki = pl.program_id(2)

    @pl.when(ki == 0)
    def _init():
        acc_ref[...] = jnp.zeros_like(acc_ref)

    q = q_ref[0]                                          # (h, d_ext, TQ)
    k = k_ref[0]                                          # (h, TK, d_ext)
    v = v_ref[0]                                          # (h, d, TK)

    # simT[h, j, i] = sum_c Kext[h,j,c] * Qext[h,c,i]
    #              = (Q_i . K_j)/(sqrt(d)*temp) - t_i/temp
    # Canonical MXU form (LHS contracts lanes, RHS contracts sublanes):
    # no in-kernel transpose.
    simT = jax.lax.dot_general(
        k, q, dimension_numbers=(((2,), (1,)), ((0,), (0,))),
        preferred_element_type=jnp.float32)               # (h, TK, TQ) f32

    # Absolute attention: ReLU only (threshold already folded into the matmul).
    attnT = jnp.maximum(simT, 0.0).astype(jnp.bfloat16)   # (h, TK, TQ)

    # outT[h, c, i] += sum_j V[h,c,j] * attnT[h,j,i]   (contraction depth TK)
    acc_ref[...] += jax.lax.dot_general(
        v, attnT, dimension_numbers=(((2,), (1,)), ((0,), (0,))),
        preferred_element_type=jnp.float32)                # (h, d, TQ) f32

    @pl.when(ki == pl.num_programs(2) - 1)
    def _store():
        o_ref[0] = acc_ref[...].astype(o_ref.dtype)


def abs_attn_core(Q_ext, K_ext, V, d, tile, vmem_cap):
    """Q_ext: (B,h,d_ext,HWp) bf16; K_ext: (B,h,HWp,d_ext) bf16; V: (B,h,d,HWp) bf16.

    Returns outT: (B, h, d, HWp) bf16.
    """
    B, Hh, d_ext, HWp = Q_ext.shape
    TQ = TK = tile
    nq = HWp // TQ
    nk = HWp // TK

    need = _vmem_need(Hh, d_ext, d, TQ, TK)
    vmem_limit = int(min(0.95 * vmem_cap, max(2 * need, 32 * 1024 * 1024)))

    flops = 2 * B * Hh * HWp * HWp * (d_ext + d)
    bytes_accessed = 2 * (Q_ext.size + B * Hh * d * HWp          # Q in + out
                          + nq * (K_ext.size + V.size))          # K/V reread per q-tile
    cost = pl.CostEstimate(flops=int(flops), transcendentals=0,
                           bytes_accessed=int(bytes_accessed))

    return pl.pallas_call(
        _abs_attn_kernel,
        out_shape=jax.ShapeDtypeStruct((B, Hh, d, HWp), jnp.bfloat16),
        grid=(B, nq, nk),
        in_specs=[
            pl.BlockSpec((1, Hh, d_ext, TQ), lambda b, qi, ki: (b, 0, 0, qi)),  # Q_ext
            pl.BlockSpec((1, Hh, TK, d_ext), lambda b, qi, ki: (b, 0, ki, 0)),  # K_ext
            pl.BlockSpec((1, Hh, d, TK), lambda b, qi, ki: (b, 0, 0, ki)),      # V
        ],
        out_specs=pl.BlockSpec((1, Hh, d, TQ), lambda b, qi, ki: (b, 0, 0, qi)),
        scratch_shapes=[pltpu.VMEM((Hh, d, TQ), jnp.float32)],
        compiler_params=pltpu.CompilerParams(
            dimension_semantics=("parallel", "parallel", "arbitrary"),
            vmem_limit_bytes=vmem_limit),
        cost_estimate=cost,
    )(Q_ext, K_ext, V)


# ----------------------------------------------------------------------------
# Plain-JAX glue (1x1 convs as channel matmuls, bilinear resizes, reshapes)
# ----------------------------------------------------------------------------
def conv1x1_nchw(x, w, b):
    # x: (B, C, H, W);  w: (O, C);  b: (O,)
    return jnp.einsum('oc,bchw->bohw', w, x) + b[None, :, None, None]


def resize_bilinear(x, h, w):
    # TODO(synk): matches F.interpolate(mode='bilinear', align_corners=False)
    # (half-pixel centers, no antialias); done in XLA, not in the Pallas kernel.
    return jax.image.resize(x, (x.shape[0], x.shape[1], h, w),
                            method='bilinear', antialias=False)


def cross_frame_absolute_attn_forward(params, second_frame, first_frame_aligned,
                                      second_frame_feat, first_frame_feat_aligned,
                                      *, heads, embed_dim, temperature=3000.0):
    B, _, H, W = second_frame.shape
    HW = H * W
    d = embed_dim
    inv_temp = 1.0 / float(temperature)
    inv_sqrt_d = 1.0 / math.sqrt(d)

    first_frame_feat_up = resize_bilinear(first_frame_feat_aligned, H, W)

    # 1x1 convs as per-head channel matmuls, emitted directly in the layouts
    # the kernel wants (no HBM transpose passes around the pallas_call):
    #   Q, V -> (B, h, d, HW)   (channels in sublanes, HW in lanes)
    #   K    -> (B, h, HW, d)   (so the sim matmul is the canonical MXU form)
    wq = params['wq'].reshape(heads, d, -1)
    wk = params['wk'].reshape(heads, d, -1)
    wv = params['wv'].reshape(heads, d, -1)
    bq = params['bq'].reshape(heads, d)
    bk = params['bk'].reshape(heads, d)
    bv = params['bv'].reshape(heads, d)

    Qn = (jnp.einsum('hdc,bcxy->bhdxy', wq, second_frame)
          .reshape(B, heads, d, HW) + bq[None, :, :, None])
    Kn = (jnp.einsum('hdc,bcxy->bhxyd', wk, first_frame_aligned)
          .reshape(B, heads, HW, d) + bk[None, :, None, :])
    Vn = (jnp.einsum('hdc,bcxy->bhdxy', wv, first_frame_feat_up)
          .reshape(B, heads, d, HW) + bv[None, :, :, None])

    # Per-query adaptive threshold t_i = Q_i . tw + tb  (tiny XLA matmul).
    t = jnp.einsum('bhdq,d->bhq', Qn, params['tw'][:, 0]) + params['tb'][0, 0]

    # Fold both scalings AND the threshold subtraction into the sim matmul:
    #   Q channels scaled by 1/(sqrt(d)*temp); extra Q channel = t/temp
    #   K channels unscaled;                   extra K channel = -1
    # -> simT = (Q.K)/(sqrt(d)*temp) - t/temp and the kernel does relu() only.
    d_ext = _round_up(d + 1, 8)
    n_zero = d_ext - d - 1
    q_parts = [Qn * (inv_sqrt_d * inv_temp), (t * inv_temp)[:, :, None, :]]
    k_parts = [Kn, -jnp.ones((B, heads, HW, 1), Kn.dtype)]
    if n_zero:
        q_parts.append(jnp.zeros((B, heads, n_zero, HW), Qn.dtype))
        k_parts.append(jnp.zeros((B, heads, HW, n_zero), Kn.dtype))
    Q_ext = jnp.concatenate(q_parts, axis=2).astype(jnp.bfloat16)
    K_ext = jnp.concatenate(k_parts, axis=3).astype(jnp.bfloat16)
    Vb = Vn.astype(jnp.bfloat16)

    # VMEM-budget-aware tile choice + spatial padding so HW never needs a
    # 128-multiple divisor.  Padded keys have K = V = 0 so they contribute
    # exactly nothing (no normalization); padded query columns are sliced off.
    vmem_cap = _vmem_capacity_bytes()
    tile = _choose_tile(heads, d_ext, d, HW, vmem_cap)
    HWp = _round_up(max(HW, tile), tile)
    if HWp != HW:
        pad = HWp - HW
        Q_ext = jnp.pad(Q_ext, ((0, 0), (0, 0), (0, 0), (0, pad)))
        K_ext = jnp.pad(K_ext, ((0, 0), (0, 0), (0, pad), (0, 0)))
        Vb = jnp.pad(Vb, ((0, 0), (0, 0), (0, 0), (0, pad)))

    # Pallas hot path: transposed sim + ReLU + weighted sum over key tiles.
    outT = abs_attn_core(Q_ext, K_ext, Vb, d, tile, vmem_cap)   # (B,h,d,HWp) bf16
    out_attn = outT[..., :HW].reshape(B, heads * d, H, W)

    out_feat = conv1x1_nchw(out_attn, params['wo'], params['bo'])  # (B, feat_dim, H, W)
    Hf, Wf = second_frame_feat.shape[-2:]
    out_feat_down = resize_bilinear(out_feat, Hf, Wf)
    final_feat = second_frame_feat + out_feat_down
    return final_feat, out_feat_down


# ----------------------------------------------------------------------------
# Deterministic parameter init (synthetic; shapes follow nn.Module __init__)
# ----------------------------------------------------------------------------
def init_params(key, in_channels, feat_dim, embed_dim, heads):
    ks = jax.random.split(key, 9)
    ed = embed_dim * heads
    return {
        # 1x1 conv weights stored as (out_ch, in_ch)
        'wq': jax.random.normal(ks[0], (ed, in_channels), jnp.float32) * 0.1,
        'bq': jax.random.normal(ks[1], (ed,), jnp.float32) * 0.01,
        'wk': jax.random.normal(ks[2], (ed, in_channels), jnp.float32) * 0.1,
        'bk': jax.random.normal(ks[3], (ed,), jnp.float32) * 0.01,
        'wv': jax.random.normal(ks[4], (ed, feat_dim), jnp.float32) * 0.1,
        'bv': jax.random.normal(ks[5], (ed,), jnp.float32) * 0.01,
        'wo': jax.random.normal(ks[6], (feat_dim, ed), jnp.float32) * 0.1,
        'bo': jax.random.normal(ks[7], (feat_dim,), jnp.float32) * 0.01,
        # threshold_fc: Linear(embed_dim, 1), stored transposed as (d, 1)
        'tw': jax.random.normal(ks[8], (embed_dim, 1), jnp.float32) * 0.1,
        'tb': jnp.zeros((1, 1), jnp.float32),
    }


if __name__ == "__main__":
    B = 2
    in_channels = 3
    feat_dim = 4
    embed_dim = 32
    heads = 2
    H = W = 16           # frame resolution -> HW = 256
    Hf = Wf = 8          # feature-map resolution (exercises both resizes)

    key = jax.random.PRNGKey(0)
    k_in, k_par = jax.random.split(key)
    k1, k2, k3, k4 = jax.random.split(k_in, 4)

    second_frame = jax.random.normal(k1, (B, in_channels, H, W), jnp.float32)
    first_frame_aligned = jax.random.normal(k2, (B, in_channels, H, W), jnp.float32)
    second_frame_feat = jax.random.normal(k3, (B, feat_dim, Hf, Wf), jnp.float32)
    first_frame_feat_aligned = jax.random.normal(k4, (B, feat_dim, Hf, Wf), jnp.float32)

    params = init_params(k_par, in_channels, feat_dim, embed_dim, heads)

    fwd = jax.jit(functools.partial(cross_frame_absolute_attn_forward,
                                    heads=heads, embed_dim=embed_dim))
    final_feat, out_feat_down = fwd(params, second_frame, first_frame_aligned,
                                    second_frame_feat, first_frame_feat_aligned)
    jax.block_until_ready((final_feat, out_feat_down))

    assert final_feat.shape == (B, feat_dim, Hf, Wf)
    assert out_feat_down.shape == (B, feat_dim, Hf, Wf)
    assert bool(jnp.all(jnp.isfinite(final_feat)))
    print("KERNEL_OK")
</pallas_src>

<mosaic_0001>
module attributes {stable_mosaic.version = 11 : i64} {
  func.func @_abs_attn_kernel(%arg0: i32, %arg1: i32, %arg2: i32, %arg3: memref<1x2x40x256xbf16, #tpu.memory_space<vmem>>, %arg4: memref<1x2x256x40xbf16, #tpu.memory_space<vmem>>, %arg5: memref<1x2x32x256xbf16, #tpu.memory_space<vmem>>, %arg6: memref<1x2x32x256xbf16, #tpu.memory_space<vmem>>, %arg7: memref<2x32x256xf32, #tpu.memory_space<vmem>>) attributes {dimension_semantics = [#tpu.dimension_semantics<parallel>, #tpu.dimension_semantics<parallel>, #tpu.dimension_semantics<arbitrary>], iteration_bounds = array<i64: 2, 1, 1>, scalar_prefetch = 0 : i64, scratch_operands = 1 : i64, tpu.core_type = #tpu.core_type<tc>, window_params = [{transform_indices = @transform_0, window_bounds = array<i64: 1, 2, 40, 256>}, {transform_indices = @transform_1, window_bounds = array<i64: 1, 2, 256, 40>}, {transform_indices = @transform_2, window_bounds = array<i64: 1, 2, 32, 256>}, {transform_indices = @transform_3, window_bounds = array<i64: 1, 2, 32, 256>}]} {
    %c0_i32 = arith.constant 0 : i32
    %0 = arith.cmpi eq, %arg2, %c0_i32 : i32
    %1 = arith.extui %0 : i1 to i32
    %c0_i32_0 = arith.constant 0 : i32
    %2 = arith.cmpi ne, %1, %c0_i32_0 : i32
    scf.if %2 {
      %cst_22 = arith.constant 0.000000e+00 : f32
      %20 = vector.broadcast %cst_22 : f32 to vector<2x32x256xf32>
      %c0_23 = arith.constant 0 : index
      %c0_24 = arith.constant 0 : index
      %c0_25 = arith.constant 0 : index
      %21 = vector.load %arg7[%c0_23, %c0_24, %c0_25] : memref<2x32x256xf32, #tpu.memory_space<vmem>>, vector<2x32x256xf32>
      tpu.vector_store %arg7[%c0_23, %c0_24, %c0_25], %20 {strides = array<i32>} : memref<2x32x256xf32, #tpu.memory_space<vmem>>, vector<2x32x256xf32>,
    } else {
    }
    %c0 = arith.constant 0 : index
    %c0_1 = arith.constant 0 : index
    %c0_2 = arith.constant 0 : index
    %c0_3 = arith.constant 0 : index
    %3 = vector.load %arg3[%c0, %c0_1, %c0_2, %c0_3] : memref<1x2x40x256xbf16, #tpu.memory_space<vmem>>, vector<1x2x40x256xbf16>
    %4 = vector.shape_cast %3 : vector<1x2x40x256xbf16> to vector<2x40x256xbf16>
    %c0_4 = arith.constant 0 : index
    %c0_5 = arith.constant 0 : index
    %c0_6 = arith.constant 0 : index
    %c0_7 = arith.constant 0 : index
    %5 = vector.load %arg4[%c0_4, %c0_5, %c0_6, %c0_7] : memref<1x2x256x40xbf16, #tpu.memory_space<vmem>>, vector<1x2x256x40xbf16>
    %6 = vector.shape_cast %5 : vector<1x2x256x40xbf16> to vector<2x256x40xbf16>
    %c0_8 = arith.constant 0 : index
    %c0_9 = arith.constant 0 : index
    %c0_10 = arith.constant 0 : index
    %c0_11 = arith.constant 0 : index
    %7 = vector.load %arg5[%c0_8, %c0_9, %c0_10, %c0_11] : memref<1x2x32x256xbf16, #tpu.memory_space<vmem>>, vector<1x2x32x256xbf16>
    %8 = vector.shape_cast %7 : vector<1x2x32x256xbf16> to vector<2x32x256xbf16>
    %cst = arith.constant dense<0.000000e+00> : vector<2x256x256xf32>
    %9 = tpu.matmul %6, %4, %cst {dimension_numbers = #tpu.dot_dimension_numbers<[2], [1], [1], [2], [0, 0, 0, 1, 1, 2], [0], [0]>} : vector<2x256x40xbf16>, vector<2x40x256xbf16>, vector<2x256x256xf32> -> vector<2x256x256xf32>
    %cst_12 = arith.constant 0.000000e+00 : f32
    %10 = vector.broadcast %cst_12 : f32 to vector<2x256x256xf32>
    %11 = arith.maximumf %9, %10 : vector<2x256x256xf32>
    %12 = arith.truncf %11 : vector<2x256x256xf32> to vector<2x256x256xbf16>
    %c0_13 = arith.constant 0 : index
    %c0_14 = arith.constant 0 : index
    %c0_15 = arith.constant 0 : index
    %13 = vector.load %arg7[%c0_13, %c0_14, %c0_15] : memref<2x32x256xf32, #tpu.memory_space<vmem>>, vector<2x32x256xf32>
    %cst_16 = arith.constant dense<0.000000e+00> : vector<2x32x256xf32>
    %14 = tpu.matmul %8, %12, %cst_16 {dimension_numbers = #tpu.dot_dimension_numbers<[2], [1], [1], [2], [0, 0, 0, 1, 1, 2], [0], [0]>} : vector<2x32x256xbf16>, vector<2x256x256xbf16>, vector<2x32x256xf32> -> vector<2x32x256xf32>
    %15 = arith.addf %13, %14 : vector<2x32x256xf32>
    %c0_17 = arith.constant 0 : index
    %c0_18 = arith.constant 0 : index
    %c0_19 = arith.constant 0 : index
    %16 = vector.load %arg7[%c0_17, %c0_18, %c0_19] : memref<2x32x256xf32, #tpu.memory_space<vmem>>, vector<2x32x256xf32>
    tpu.vector_store %arg7[%c0_17, %c0_18, %c0_19], %15 {strides = array<i32>} : memref<2x32x256xf32, #tpu.memory_space<vmem>>, vector<2x32x256xf32>,
    %c0_i32_20 = arith.constant 0 : i32
    %17 = arith.cmpi eq, %arg2, %c0_i32_20 : i32
    %18 = arith.extui %17 : i1 to i32
    %c0_i32_21 = arith.constant 0 : i32
    %19 = arith.cmpi ne, %18, %c0_i32_21 : i32
    scf.if %19 {
      %c0_22 = arith.constant 0 : index
      %c0_23 = arith.constant 0 : index
      %c0_24 = arith.constant 0 : index
      %20 = vector.load %arg7[%c0_22, %c0_23, %c0_24] : memref<2x32x256xf32, #tpu.memory_space<vmem>>, vector<2x32x256xf32>
      %21 = arith.truncf %20 : vector<2x32x256xf32> to vector<2x32x256xbf16>
      %c0_25 = arith.constant 0 : index
      %c0_26 = arith.constant 0 : index
      %c0_27 = arith.constant 0 : index
      %c0_28 = arith.constant 0 : index
      %22 = vector.load %arg6[%c0_25, %c0_26, %c0_27, %c0_28] : memref<1x2x32x256xbf16, #tpu.memory_space<vmem>>, vector<1x2x32x256xbf16>
      %23 = vector.shape_cast %22 : vector<1x2x32x256xbf16> to vector<2x32x256xbf16>
      %24 = vector.shape_cast %21 : vector<2x32x256xbf16> to vector<1x2x32x256xbf16>
      tpu.vector_store %arg6[%c0_25, %c0_26, %c0_27, %c0_28], %24 {strides = array<i32>} : memref<1x2x32x256xbf16, #tpu.memory_space<vmem>>, vector<1x2x32x256xbf16>,
    } else {
    }
    return
  }
  func.func @transform_0(%arg0: i32, %arg1: i32, %arg2: i32) -> (i32, i32, i32, i32) {
    %c0_i32 = arith.constant 0 : i32
    %c0_i32_0 = arith.constant 0 : i32
    %c0_i32_1 = arith.constant 0 : i32
    return %arg0, %c0_i32, %c0_i32_0, %arg1 : i32, i32, i32, i32
  }
  func.func @transform_1(%arg0: i32, %arg1: i32, %arg2: i32) -> (i32, i32, i32, i32) {
    %c0_i32 = arith.constant 0 : i32
    %c0_i32_0 = arith.constant 0 : i32
    %c0_i32_1 = arith.constant 0 : i32
    return %arg0, %c0_i32, %arg2, %c0_i32_0 : i32, i32, i32, i32
  }
  func.func @transform_2(%arg0: i32, %arg1: i32, %arg2: i32) -> (i32, i32, i32, i32) {
    %c0_i32 = arith.constant 0 : i32
    %c0_i32_0 = arith.constant 0 : i32
    %c0_i32_1 = arith.constant 0 : i32
    return %arg0, %c0_i32, %c0_i32_0, %arg2 : i32, i32, i32, i32
  }
  func.func @transform_3(%arg0: i32, %arg1: i32, %arg2: i32) -> (i32, i32, i32, i32) {
    %c0_i32 = arith.constant 0 : i32
    %c0_i32_0 = arith.constant 0 : i32
    %c0_i32_1 = arith.constant 0 : i32
    return %arg0, %c0_i32, %c0_i32_0, %arg1 : i32, i32, i32, i32
  }
}

</mosaic_0001>

<bundles_post_ra>
// kernel: cross_frame_absolute_attn_forward.1
= control target key start
LH: loop header
LB: loop body
LE: loop exit
PB: predicated region body
PF: predicated region fallthrough
CT: control target
= control target key end

     0   :  { %s1935_s12 = smov 0   ;;  %s1937_s13 = smov 0   ;;  %s2091_s0 = inlined_call_operand.vmem [shape: bf16[2,2,40,256], index: 0, kind: input, shape index: {}]   ;;  %s2092_s1 = inlined_call_operand.vmem [shape: bf16[2,2,256,40], index: 1, kind: input, shape index: {}]   ;;  %s2093_s2 = inlined_call_operand.vmem [shape: bf16[2,2,32,256], index: 2, kind: input, shape index: {}]   ;;  %s2094_s3 = inlined_call_operand.vmem [shape: bf16[2,2,32,256], index: 3, kind: output, shape index: {}]  }
   0x1   :  { %s1939_s14 = smov 0  }
   0x2 LB: > { %s32_s15 = sadd.s32 1, %s1908_s13  ;;  %p1689_p0 = scmp.ge.s32.totalorder %s1912_s14, 1  ;;  %s1912_s14 = sphi %s1939_s14, %s13_s14   ;;  %s1908_s13 = sphi %s1937_s13, %s2096_s13   ;;  %s1904_s12 = sphi %s1935_s12, %s2095_s12  }
   0x3   : > { %p34_p1 = scmp.ge.s32.totalorder %s32_s15, 2  ;;  %p199_p2 = scmp.lt.s32.totalorder %s1912_s14, 3 }
   0x5   : > { %s2098_s15 = smov (%p34_p1, %s32_s15), 0  ;;  %p200_p3 = pnand %p1689_p0, %p199_p2 }
   0x6   : > { %p250_p4 = scmp.lt.s32.totalorder (!%p200_p3), %s1904_s12, 1  ;;  %v1914_v0 = vmov (!%p200_p3), 0   ;;  %vm546_vm0 = vcmask (!%p200_p3), 1043456   ;;  %vm497_vm1 = vcmask (!%p200_p3), 326656  }
   0x7   : > { %203 = sbr.rel (%p200_p3) target bundleno = 601 (0x259), region = 32  ;;  %585 = vmatprep.mubr.bf16.mxu0 (!%p200_p3), %v1914_v0  ;;  %937 = vmatprep.mubr.bf16.mxu1 (!%p200_p3), %v1914_v0 }
   0xe   : > { %s2100_s12 = smov (!%p250_p4, %s1904_s12), 1 }
   0xf   : > { %s1804_s16 = smul.u32 80, %s2100_s12  ;;  %s1793_s17 = sshll.u32 %s2100_s12, 8 }
  0x10   : > { %s1962_s20 = scalar_lea.vmem %s2092_s1, %s1793_s17  ;;  %s1794_s24 = sshll.u32 %s2100_s12, 6 }
  0x11   : > { %s257_s23 = scalar_lea.vmem %s2091_s0, %s1804_s16  ;;  %v1846_v17 = vld [vmem:[%s1962_s20] sm:$0xff]   ;;  %v1848_v19 = vld [vmem:[%s1962_s20 + $0x8] sm:$0xff]   ;;  %v1850_v21 = vld [vmem:[%s1962_s20 + $0x10] sm:$0xff]   ;;  %s2067_s27 = scalar_lea.vmem %s2093_s2, %s1794_s24 }
  0x12   : > { %v1830_v1 = vld [vmem:[%s257_s23 + $0x4] ss:$8 sps:$4 sm:$0xff]   ;;  %v1834_v3 = vld [vmem:[%s257_s23] ss:$8 sps:$4 sm:$0xff]   ;;  %v1836_v5 = vld [vmem:[%s257_s23 + $0x14] ss:$8 sps:$4 sm:$0xff]   ;;  %s287_s30 = scalar_lea.vmem %s2094_s3, %s1794_s24 }
  0x13   : > { %v1832_v2 = vld [vmem:[%s257_s23 + $0x2c] ss:$8 sps:$4 sm:$0xff]   ;;  %553 = vmatprep.subr.bf16.mxu0 %v1830_v1  ;;  %v1835_v4 = vld [vmem:[%s257_s23 + $0x28] ss:$8 sps:$4 sm:$0xff]   ;;  %v1838_v6 = vld [vmem:[%s257_s23 + $0x3c] ss:$8 sps:$4 sm:$0xff]  }
  0x14   : > { %905 = vmatprep.subr.bf16.mxu1 %v1832_v2  ;;  %554 = vmatpush1.bf16.msra.mxu0 %v1834_v3  ;;  %v1840_v7 = vld [vmem:[%s257_s23 + $0x10] ss:$8 sps:$4 sm:$0xff]   ;;  %v314_v9 = vld [vmem:[%s257_s23 + $0x20] sm:$0xff]  ;;  %v319_v10 = vld [vmem:[%s257_s23 + $0x48] sm:$0xff] }
  0x15   : > { %906 = vmatpush1.bf16.msra.mxu1 %v1835_v4  ;;  %555 = vmatprep.subr.bf16.mxu0 %v1836_v5  ;;  %v1841_v8 = vld [vmem:[%s257_s23 + $0x38] ss:$8 sps:$4 sm:$0xff]   ;;  %v1718_v11 = vcombine.high %v314_v9, %v314_v9  ;;  %v1757_v12 = vcombine.high %v319_v10, %v319_v10  ;;  %v1717_v13 = vcombine.low %v314_v9, %v314_v9  ;;  %v1849_v20 = vld [vmem:[%s1962_s20 + $0x88] sm:$0xff]   ;;  %v1851_v22 = vld [vmem:[%s1962_s20 + $0x90] sm:$0xff]  }
  0x16   : > { %907 = vmatprep.subr.bf16.mxu1 %v1838_v6  ;;  %v1756_v14 = vcombine.low %v319_v10, %v319_v10  ;;  %v1847_v18 = vld [vmem:[%s1962_s20 + $0x80] sm:$0xff]   ;;  %v1852_v23 = vld [vmem:[%s1962_s20 + $0x18] sm:$0xff]   ;;  %v1856_v27 = vld [vmem:[%s1962_s20 + $0x28] sm:$0xff]  }
  0x17   : > { %v548_v15 = vsel %vm546_vm0, %v1717_v13, 0  ;;  %v1853_v24 = vld [vmem:[%s1962_s20 + $0x98] sm:$0xff]   ;;  %v1854_v25 = vld [vmem:[%s1962_s20 + $0x20] sm:$0xff]   ;;  %v1857_v28 = vld [vmem:[%s1962_s20 + $0xa8] sm:$0xff]  }
  0x18   : > { %556 = vmatpush1.bf16.msra.mxu0 %v1840_v7  ;;  %v900_v16 = vsel %vm546_vm0, %v1756_v14, 0  ;;  %v1855_v26 = vld [vmem:[%s1962_s20 + $0xa0] sm:$0xff]   ;;  %v1858_v29 = vld [vmem:[%s1962_s20 + $0x30] sm:$0xff]   ;;  %v1860_v31 = vld [vmem:[%s1962_s20 + $0x38] sm:$0xff]  }
  0x19   : > { %908 = vmatpush1.bf16.msra.mxu1 %v1841_v8  ;;  %1719 = vmatprep.subr.msk.bf16.mxu0 %vm546_vm0, %v1718_v11  ;;  %v1859_v30 = vld [vmem:[%s1962_s20 + $0xb0] sm:$0xff]   ;;  %v1861_v32 = vld [vmem:[%s1962_s20 + $0xb8] sm:$0xff]   ;;  %v1862_v33 = vld [vmem:[%s1962_s20 + $0x40] sm:$0xff]  }
  0x1a   : > { %1758 = vmatprep.subr.msk.bf16.mxu1 %vm546_vm0, %v1757_v12  ;;  %v1863_v34 = vld [vmem:[%s1962_s20 + $0xc0] sm:$0xff]   ;;  %v1864_v35 = vld [vmem:[%s1962_s20 + $0x48] sm:$0xff]   ;;  %v1866_v37 = vld [vmem:[%s1962_s20 + $0x50] sm:$0xff]  }
  0x1b   : > { %v1865_v36 = vld [vmem:[%s1962_s20 + $0xc8] sm:$0xff]   ;;  %v1867_v38 = vld [vmem:[%s1962_s20 + $0xd0] sm:$0xff]   ;;  %v1868_v39 = vld [vmem:[%s1962_s20 + $0x58] sm:$0xff]  }
  0x1c   : > { %558 = vmatpush1.bf16.msra.mxu0 %v548_v15  ;;  %v1869_v40 = vld [vmem:[%s1962_s20 + $0xd8] sm:$0xff]   ;;  %v1870_v41 = vld [vmem:[%s1962_s20 + $0x60] sm:$0xff]   ;;  %v1872_v43 = vld [vmem:[%s1962_s20 + $0x68] sm:$0xff]  }
  0x1d   : > { %910 = vmatpush1.bf16.msra.mxu1 %v900_v16  ;;  %v1871_v42 = vld [vmem:[%s1962_s20 + $0xe0] sm:$0xff]   ;;  %v1873_v44 = vld [vmem:[%s1962_s20 + $0xe8] sm:$0xff]   ;;  %v1874_v45 = vld [vmem:[%s1962_s20 + $0x70] sm:$0xff]  }
  0x1e   : > { %v1875_v46 = vld [vmem:[%s1962_s20 + $0xf0] sm:$0xff]   ;;  %v1876_v47 = vld [vmem:[%s1962_s20 + $0x78] sm:$0xff]   ;;  %v1880_v61 = vld [vmem:[%s2067_s27 + $0x4] ss:$8 sps:$4 sm:$0xff]  }
  0x1f   : > { %1720 = vmatmul.mubr.msk.bf16.vlgmr.msra.gmra.mrb[0].mxu0 %vm497_vm1, %v1846_v17  ;;  %v1877_v48 = vld [vmem:[%s1962_s20 + $0xf8] sm:$0xff]   ;;  %v1883_v4 = vld [vmem:[%s2067_s27 + $0x24] ss:$8 sps:$4 sm:$0xff]  }
  0x20   : > { %1759 = vmatmul.mubr.msk.bf16.vlgmr.msra.gmra.mrb[0].mxu1 %vm497_vm1, %v1847_v18  ;;  %595 = vmatprep.mubr.bf16.mxu0 %v1914_v0 }
  0x21   : > { %947 = vmatprep.mubr.bf16.mxu1 %v1914_v0 }
  0x27   : > { %1721 = vmatmul.mubr.msk.bf16.gmra.mrb[4].mxu0 %vm497_vm1, %v1848_v19 }
  0x28   : > { %1760 = vmatmul.mubr.msk.bf16.gmra.mrb[4].mxu1 %vm497_vm1, %v1849_v20  ;;  %605 = vmatprep.mubr.bf16.mxu0 %v1914_v0 }
  0x29   : > { %957 = vmatprep.mubr.bf16.mxu1 %v1914_v0 }
  0x2f   : > { %1722 = vmatmul.mubr.msk.bf16.gmra.mrb[8].mxu0 %vm497_vm1, %v1850_v21 }
  0x30   : > { %1761 = vmatmul.mubr.msk.bf16.gmra.mrb[8].mxu1 %vm497_vm1, %v1851_v22  ;;  %615 = vmatprep.mubr.bf16.mxu0 %v1914_v0 }
  0x31   : > { %967 = vmatprep.mubr.bf16.mxu1 %v1914_v0 }
  0x37   : > { %1723 = vmatmul.mubr.msk.bf16.gmra.mrb[12].mxu0 %vm497_vm1, %v1852_v23 }
  0x38   : > { %1762 = vmatmul.mubr.msk.bf16.gmra.mrb[12].mxu1 %vm497_vm1, %v1853_v24  ;;  %625 = vmatprep.mubr.bf16.mxu0 %v1914_v0 }
  0x39   : > { %977 = vmatprep.mubr.bf16.mxu1 %v1914_v0 }
  0x3f   : > { %1724 = vmatmul.mubr.msk.bf16.gmra.mrb[16].mxu0 %vm497_vm1, %v1854_v25 }
  0x40   : > { %1763 = vmatmul.mubr.msk.bf16.gmra.mrb[16].mxu1 %vm497_vm1, %v1855_v26  ;;  %635 = vmatprep.mubr.bf16.mxu0 %v1914_v0 }
  0x41   : > { %987 = vmatprep.mubr.bf16.mxu1 %v1914_v0 }
  0x47   : > { %1725 = vmatmul.mubr.msk.bf16.gmra.mrb[20].mxu0 %vm497_vm1, %v1856_v27 }
  0x48   : > { %1764 = vmatmul.mubr.msk.bf16.gmra.mrb[20].mxu1 %vm497_vm1, %v1857_v28  ;;  %645 = vmatprep.mubr.bf16.mxu0 %v1914_v0 }
  0x49   : > { %997 = vmatprep.mubr.bf16.mxu1 %v1914_v0 }
  0x4f   : > { %1726 = vmatmul.mubr.msk.bf16.gmra.mrb[24].mxu0 %vm497_vm1, %v1858_v29 }
  0x50   : > { %1765 = vmatmul.mubr.msk.bf16.gmra.mrb[24].mxu1 %vm497_vm1, %v1859_v30  ;;  %655 = vmatprep.mubr.bf16.mxu0 %v1914_v0 }
  0x51   : > { %1007 = vmatprep.mubr.bf16.mxu1 %v1914_v0 }
  0x57   : > { %1727 = vmatmul.mubr.msk.bf16.gmra.mrb[28].mxu0 %vm497_vm1, %v1860_v31 }
  0x58   : > { %1766 = vmatmul.mubr.msk.bf16.gmra.mrb[28].mxu1 %vm497_vm1, %v1861_v32  ;;  %665 = vmatprep.mubr.bf16.mxu0 %v1914_v0 }
  0x59   : > { %1017 = vmatprep.mubr.bf16.mxu1 %v1914_v0 }
  0x5f   : > { %1728 = vmatmul.mubr.msk.bf16.gmra.mrb[32].mxu0 %vm497_vm1, %v1862_v33 }
  0x60   : > { %1767 = vmatmul.mubr.msk.bf16.gmra.mrb[32].mxu1 %vm497_vm1, %v1863_v34  ;;  %675 = vmatprep.mubr.bf16.mxu0 %v1914_v0 }
  0x61   : > { %1027 = vmatprep.mubr.bf16.mxu1 %v1914_v0 }
  0x67   : > { %1729 = vmatmul.mubr.msk.bf16.gmra.mrb[36].mxu0 %vm497_vm1, %v1864_v35 }
  0x68   : > { %1768 = vmatmul.mubr.msk.bf16.gmra.mrb[36].mxu1 %vm497_vm1, %v1865_v36  ;;  %685 = vmatprep.mubr.bf16.mxu0 %v1914_v0 }
  0x69   : > { %1037 = vmatprep.mubr.bf16.mxu1 %v1914_v0 }
  0x6f   : > { %1730 = vmatmul.mubr.msk.bf16.gmra.mrb[40].mxu0 %vm497_vm1, %v1866_v37 }
  0x70   : > { %1769 = vmatmul.mubr.msk.bf16.gmra.mrb[40].mxu1 %vm497_vm1, %v1867_v38  ;;  %695 = vmatprep.mubr.bf16.mxu0 %v1914_v0 }
  0x71   : > { %1047 = vmatprep.mubr.bf16.mxu1 %v1914_v0 }
  0x77   : > { %1731 = vmatmul.mubr.msk.bf16.gmra.mrb[44].mxu0 %vm497_vm1, %v1868_v39 }
  0x78   : > { %1770 = vmatmul.mubr.msk.bf16.gmra.mrb[44].mxu1 %vm497_vm1, %v1869_v40  ;;  %705 = vmatprep.mubr.bf16.mxu0 %v1914_v0 }
  0x79   : > { %1057 = vmatprep.mubr.bf16.mxu1 %v1914_v0 }
  0x7f   : > { %1732 = vmatmul.mubr.msk.bf16.gmra.mrb[48].mxu0 %vm497_vm1, %v1870_v41 }
  0x80   : > { %1771 = vmatmul.mubr.msk.bf16.gmra.mrb[48].mxu1 %vm497_vm1, %v1871_v42  ;;  %715 = vmatprep.mubr.bf16.mxu0 %v1914_v0 }
  0x81   : > { %1067 = vmatprep.mubr.bf16.mxu1 %v1914_v0 }
  0x87   : > { %1733 = vmatmul.mubr.msk.bf16.gmra.mrb[52].mxu0 %vm497_vm1, %v1872_v43 }
  0x88   : > { %1772 = vmatmul.mubr.msk.bf16.gmra.mrb[52].mxu1 %vm497_vm1, %v1873_v44  ;;  %725 = vmatprep.mubr.bf16.mxu0 %v1914_v0 }
  0x89   : > { %1077 = vmatprep.mubr.bf16.mxu1 %v1914_v0 }
  0x8f   : > { %1734 = vmatmul.mubr.msk.bf16.gmra.mrb[56].mxu0 %vm497_vm1, %v1874_v45 }
  0x90   : > { %1773 = vmatmul.mubr.msk.bf16.gmra.mrb[56].mxu1 %vm497_vm1, %v1875_v46  ;;  %735 = vmatprep.mubr.bf16.mxu0 %v1914_v0 }
  0x91   : > { %1087 = vmatprep.mubr.bf16.mxu1 %v1914_v0 }
  0x97   : > { %1735 = vmatmul.mubr.msk.bf16.gmra.mrb[60].mxu0 %vm497_vm1, %v1876_v47 }
  0x98   : > { %1774 = vmatmul.mubr.msk.bf16.gmra.mrb[60].mxu1 %vm497_vm1, %v1877_v48  ;;  %1358 = vmatprep.mubr.bf16.mxu0 %v1880_v61 }
  0x99   : > { %1431 = vmatprep.mubr.bf16.mxu1 %v1883_v4 }
  0xf2   : > { %v587_v49 = vpop.f32.mrb[0].mxu0 }
  0xf3   : > { %v939_v50 = vpop.f32.mrb[0].mxu1  ;;  %v589_v51 = vpop.f32.mrb[1].mxu0  ;;  %v1098_v53 = vmax.f32 %v587_v49, 0.0 }
  0xf4   : > { %v941_v52 = vpop.f32.mrb[1].mxu1  ;;  %v1162_v54 = vmax.f32 %v939_v50, 0.0  ;;  %v591_v55 = vpop.f32.mrb[2].mxu0  ;;  %v1099_v62 = vmax.f32 %v589_v51, 0.0 }
  0xf5   : > { %v943_v56 = vpop.f32.mrb[2].mxu1  ;;  %v1100_v57 = vmax.f32 %v591_v55, 0.0  ;;  %v593_v59 = vpop.f32.mrb[3].mxu0  ;;  %v1163_v63 = vmax.f32 %v941_v52, 0.0 }
  0xf6   : > { %v1164_v58 = vmax.f32 %v943_v56, 0.0  ;;  %v945_v60 = vpop.f32.mrb[3].mxu1  ;;  %v1101_v0 = vmax.f32 %v593_v59, 0.0 }
  0xf7   : > { %v1165_v1 = vmax.f32 %v945_v60, 0.0  ;;  %v1226_v2 = vpack.c.bf16 %v1100_v57, %v1098_v53 }
  0xf8   : > { %v1258_v3 = vpack.c.bf16 %v1164_v58, %v1162_v54  ;;  %v1227_v5 = vpack.c.bf16 %v1101_v0, %v1099_v62 }
  0xf9   : > { %v1259_v6 = vpack.c.bf16 %v1165_v1, %v1163_v63 }
  0xfa   : > { %v597_v7 = vpop.f32.mrb[4].mxu0  ;;  %1326 = vmatprep.subr.bf16.mxu0 %v1227_v5 }
  0xfb   : > { %v949_v8 = vpop.f32.mrb[4].mxu1  ;;  %1399 = vmatprep.subr.bf16.mxu1 %v1259_v6  ;;  %v599_v9 = vpop.f32.mrb[5].mxu0  ;;  %1327 = vmatpush1.bf16.msra.mxu0 %v1226_v2  ;;  %v1102_v13 = vmax.f32 %v597_v7, 0.0 }
  0xfc   : > { %v951_v10 = vpop.f32.mrb[5].mxu1  ;;  %1400 = vmatpush1.bf16.msra.mxu1 %v1258_v3  ;;  %v601_v11 = vpop.f32.mrb[6].mxu0  ;;  %v1166_v14 = vmax.f32 %v949_v8, 0.0  ;;  %v1103_v19 = vmax.f32 %v599_v9, 0.0 }
  0xfd   : > { %v953_v12 = vpop.f32.mrb[6].mxu1  ;;  %v1104_v15 = vmax.f32 %v601_v11, 0.0  ;;  %v603_v17 = vpop.f32.mrb[7].mxu0  ;;  %v1167_v20 = vmax.f32 %v951_v10, 0.0 }
  0xfe   : > { %v1168_v16 = vmax.f32 %v953_v12, 0.0  ;;  %v955_v18 = vpop.f32.mrb[7].mxu1  ;;  %v1105_v21 = vmax.f32 %v603_v17, 0.0 }
  0xff   : > { %v1169_v22 = vmax.f32 %v955_v18, 0.0  ;;  %v1228_v23 = vpack.c.bf16 %v1104_v15, %v1102_v13 }
 0x100   : > { %v1260_v24 = vpack.c.bf16 %v1168_v16, %v1166_v14  ;;  %v1229_v25 = vpack.c.bf16 %v1105_v21, %v1103_v19 }
 0x101   : > { %v1261_v26 = vpack.c.bf16 %v1169_v22, %v1167_v20 }
 0x102   : > { %v607_v27 = vpop.f32.mrb[8].mxu0  ;;  %1328 = vmatprep.subr.bf16.mxu0 %v1229_v25 }
 0x103   : > { %v959_v28 = vpop.f32.mrb[8].mxu1  ;;  %1401 = vmatprep.subr.bf16.mxu1 %v1261_v26  ;;  %v609_v29 = vpop.f32.mrb[9].mxu0  ;;  %1329 = vmatpush1.bf16.msra.mxu0 %v1228_v23  ;;  %v1106_v33 = vmax.f32 %v607_v27, 0.0 }
 0x104   : > { %v961_v30 = vpop.f32.mrb[9].mxu1  ;;  %1402 = vmatpush1.bf16.msra.mxu1 %v1260_v24  ;;  %v611_v31 = vpop.f32.mrb[10].mxu0  ;;  %v1170_v34 = vmax.f32 %v959_v28, 0.0  ;;  %v1107_v39 = vmax.f32 %v609_v29, 0.0 }
 0x105   : > { %v963_v32 = vpop.f32.mrb[10].mxu1  ;;  %v1108_v35 = vmax.f32 %v611_v31, 0.0  ;;  %v613_v37 = vpop.f32.mrb[11].mxu0  ;;  %v1171_v40 = vmax.f32 %v961_v30, 0.0 }
 0x106   : > { %v1172_v36 = vmax.f32 %v963_v32, 0.0  ;;  %v965_v38 = vpop.f32.mrb[11].mxu1  ;;  %v1109_v41 = vmax.f32 %v613_v37, 0.0 }
 0x107   : > { %v1173_v42 = vmax.f32 %v965_v38, 0.0  ;;  %v1230_v43 = vpack.c.bf16 %v1108_v35, %v1106_v33 }
 0x108   : > { %v1262_v44 = vpack.c.bf16 %v1172_v36, %v1170_v34  ;;  %v1231_v45 = vpack.c.bf16 %v1109_v41, %v1107_v39 }
 0x109   : > { %v1263_v46 = vpack.c.bf16 %v1173_v42, %v1171_v40 }
 0x10a   : > { %v617_v47 = vpop.f32.mrb[12].mxu0  ;;  %1330 = vmatprep.subr.bf16.mxu0 %v1231_v45 }
 0x10b   : > { %v969_v48 = vpop.f32.mrb[12].mxu1  ;;  %1403 = vmatprep.subr.bf16.mxu1 %v1263_v46  ;;  %v619_v49 = vpop.f32.mrb[13].mxu0  ;;  %1331 = vmatpush1.bf16.msra.mxu0 %v1230_v43  ;;  %v1110_v53 = vmax.f32 %v617_v47, 0.0 }
 0x10c   : > { %v971_v50 = vpop.f32.mrb[13].mxu1  ;;  %1404 = vmatpush1.bf16.msra.mxu1 %v1262_v44  ;;  %v621_v51 = vpop.f32.mrb[14].mxu0  ;;  %v1174_v54 = vmax.f32 %v969_v48, 0.0  ;;  %v1111_v59 = vmax.f32 %v619_v49, 0.0 }
 0x10d   : > { %v973_v52 = vpop.f32.mrb[14].mxu1  ;;  %v1112_v55 = vmax.f32 %v621_v51, 0.0  ;;  %v623_v57 = vpop.f32.mrb[15].mxu0  ;;  %v1175_v60 = vmax.f32 %v971_v50, 0.0 }
 0x10e   : > { %v1176_v56 = vmax.f32 %v973_v52, 0.0  ;;  %v975_v58 = vpop.f32.mrb[15].mxu1  ;;  %v1113_v61 = vmax.f32 %v623_v57, 0.0 }
 0x10f   : > { %v1177_v62 = vmax.f32 %v975_v58, 0.0  ;;  %v1232_v63 = vpack.c.bf16 %v1112_v55, %v1110_v53 }
 0x110   : > { %v1264_v0 = vpack.c.bf16 %v1176_v56, %v1174_v54  ;;  %v1233_v1 = vpack.c.bf16 %v1113_v61, %v1111_v59 }
 0x111   : > { %v1265_v2 = vpack.c.bf16 %v1177_v62, %v1175_v60 }
 0x112   : > { %v627_v3 = vpop.f32.mrb[16].mxu0  ;;  %1332 = vmatprep.subr.bf16.mxu0 %v1233_v1 }
 0x113   : > { %v979_v4 = vpop.f32.mrb[16].mxu1  ;;  %1405 = vmatprep.subr.bf16.mxu1 %v1265_v2  ;;  %v629_v5 = vpop.f32.mrb[17].mxu0  ;;  %1333 = vmatpush1.bf16.msra.mxu0 %v1232_v63  ;;  %v1114_v9 = vmax.f32 %v627_v3, 0.0 }
 0x114   : > { %v981_v6 = vpop.f32.mrb[17].mxu1  ;;  %1406 = vmatpush1.bf16.msra.mxu1 %v1264_v0  ;;  %v631_v7 = vpop.f32.mrb[18].mxu0  ;;  %v1178_v10 = vmax.f32 %v979_v4, 0.0  ;;  %v1115_v15 = vmax.f32 %v629_v5, 0.0 }
 0x115   : > { %v983_v8 = vpop.f32.mrb[18].mxu1  ;;  %v1116_v11 = vmax.f32 %v631_v7, 0.0  ;;  %v633_v13 = vpop.f32.mrb[19].mxu0  ;;  %v1179_v16 = vmax.f32 %v981_v6, 0.0 }
 0x116   : > { %v1180_v12 = vmax.f32 %v983_v8, 0.0  ;;  %v985_v14 = vpop.f32.mrb[19].mxu1  ;;  %v1117_v17 = vmax.f32 %v633_v13, 0.0 }
 0x117   : > { %v1181_v18 = vmax.f32 %v985_v14, 0.0  ;;  %v1234_v19 = vpack.c.bf16 %v1116_v11, %v1114_v9 }
 0x118   : > { %v1266_v20 = vpack.c.bf16 %v1180_v12, %v1178_v10  ;;  %v1235_v21 = vpack.c.bf16 %v1117_v17, %v1115_v15 }
 0x119   : > { %v1267_v22 = vpack.c.bf16 %v1181_v18, %v1179_v16 }
 0x11a   : > { %v637_v23 = vpop.f32.mrb[20].mxu0  ;;  %1334 = vmatprep.subr.bf16.mxu0 %v1235_v21 }
 0x11b   : > { %v989_v24 = vpop.f32.mrb[20].mxu1  ;;  %1407 = vmatprep.subr.bf16.mxu1 %v1267_v22  ;;  %v639_v25 = vpop.f32.mrb[21].mxu0  ;;  %1335 = vmatpush1.bf16.msra.mxu0 %v1234_v19  ;;  %v1118_v29 = vmax.f32 %v637_v23, 0.0 }
 0x11c   : > { %v991_v26 = vpop.f32.mrb[21].mxu1  ;;  %1408 = vmatpush1.bf16.msra.mxu1 %v1266_v20  ;;  %v641_v27 = vpop.f32.mrb[22].mxu0  ;;  %v1182_v30 = vmax.f32 %v989_v24, 0.0  ;;  %v1119_v35 = vmax.f32 %v639_v25, 0.0 }
 0x11d   : > { %v993_v28 = vpop.f32.mrb[22].mxu1  ;;  %v1120_v31 = vmax.f32 %v641_v27, 0.0  ;;  %v643_v33 = vpop.f32.mrb[23].mxu0  ;;  %v1183_v36 = vmax.f32 %v991_v26, 0.0 }
 0x11e   : > { %v1184_v32 = vmax.f32 %v993_v28, 0.0  ;;  %v995_v34 = vpop.f32.mrb[23].mxu1  ;;  %v1121_v37 = vmax.f32 %v643_v33, 0.0 }
 0x11f   : > { %v1185_v38 = vmax.f32 %v995_v34, 0.0  ;;  %v1236_v39 = vpack.c.bf16 %v1120_v31, %v1118_v29 }
 0x120   : > { %v1268_v40 = vpack.c.bf16 %v1184_v32, %v1182_v30  ;;  %v1237_v41 = vpack.c.bf16 %v1121_v37, %v1119_v35 }
 0x121   : > { %v1269_v42 = vpack.c.bf16 %v1185_v38, %v1183_v36 }
 0x122   : > { %v647_v43 = vpop.f32.mrb[24].mxu0  ;;  %1336 = vmatprep.subr.bf16.mxu0 %v1237_v41 }
 0x123   : > { %v999_v44 = vpop.f32.mrb[24].mxu1  ;;  %1409 = vmatprep.subr.bf16.mxu1 %v1269_v42  ;;  %v649_v45 = vpop.f32.mrb[25].mxu0  ;;  %1337 = vmatpush1.bf16.msra.mxu0 %v1236_v39  ;;  %v1122_v49 = vmax.f32 %v647_v43, 0.0 }
 0x124   : > { %v1001_v46 = vpop.f32.mrb[25].mxu1  ;;  %1410 = vmatpush1.bf16.msra.mxu1 %v1268_v40  ;;  %v651_v47 = vpop.f32.mrb[26].mxu0  ;;  %v1186_v50 = vmax.f32 %v999_v44, 0.0  ;;  %v1123_v55 = vmax.f32 %v649_v45, 0.0 }
 0x125   : > { %v1003_v48 = vpop.f32.mrb[26].mxu1  ;;  %v1124_v51 = vmax.f32 %v651_v47, 0.0  ;;  %v653_v53 = vpop.f32.mrb[27].mxu0  ;;  %v1187_v56 = vmax.f32 %v1001_v46, 0.0 }
 0x126   : > { %v1188_v52 = vmax.f32 %v1003_v48, 0.0  ;;  %v1005_v54 = vpop.f32.mrb[27].mxu1  ;;  %v1125_v57 = vmax.f32 %v653_v53, 0.0 }
 0x127   : > { %v1189_v58 = vmax.f32 %v1005_v54, 0.0  ;;  %v1238_v59 = vpack.c.bf16 %v1124_v51, %v1122_v49 }
 0x128   : > { %v1270_v60 = vpack.c.bf16 %v1188_v52, %v1186_v50  ;;  %v1239_v61 = vpack.c.bf16 %v1125_v57, %v1123_v55 }
 0x129   : > { %v1271_v62 = vpack.c.bf16 %v1189_v58, %v1187_v56 }
 0x12a   : > { %v657_v63 = vpop.f32.mrb[28].mxu0  ;;  %1338 = vmatprep.subr.bf16.mxu0 %v1239_v61 }
 0x12b   : > { %v1009_v0 = vpop.f32.mrb[28].mxu1  ;;  %1411 = vmatprep.subr.bf16.mxu1 %v1271_v62  ;;  %v659_v1 = vpop.f32.mrb[29].mxu0  ;;  %1339 = vmatpush1.bf16.msra.mxu0 %v1238_v59  ;;  %v1126_v5 = vmax.f32 %v657_v63, 0.0 }
 0x12c   : > { %v1011_v2 = vpop.f32.mrb[29].mxu1  ;;  %1412 = vmatpush1.bf16.msra.mxu1 %v1270_v60  ;;  %v661_v3 = vpop.f32.mrb[30].mxu0  ;;  %v1190_v6 = vmax.f32 %v1009_v0, 0.0  ;;  %v1127_v11 = vmax.f32 %v659_v1, 0.0 }
 0x12d   : > { %v1013_v4 = vpop.f32.mrb[30].mxu1  ;;  %v1128_v7 = vmax.f32 %v661_v3, 0.0  ;;  %v663_v9 = vpop.f32.mrb[31].mxu0  ;;  %v1191_v12 = vmax.f32 %v1011_v2, 0.0 }
 0x12e   : > { %v1192_v8 = vmax.f32 %v1013_v4, 0.0  ;;  %v1015_v10 = vpop.f32.mrb[31].mxu1  ;;  %v1129_v13 = vmax.f32 %v663_v9, 0.0 }
 0x12f   : > { %v1193_v14 = vmax.f32 %v1015_v10, 0.0  ;;  %v1240_v15 = vpack.c.bf16 %v1128_v7, %v1126_v5 }
 0x130   : > { %v1272_v16 = vpack.c.bf16 %v1192_v8, %v1190_v6  ;;  %v1241_v17 = vpack.c.bf16 %v1129_v13, %v1127_v11 }
 0x131   : > { %v1273_v18 = vpack.c.bf16 %v1193_v14, %v1191_v12 }
 0x132   : > { %v667_v19 = vpop.f32.mrb[32].mxu0  ;;  %1340 = vmatprep.subr.bf16.mxu0 %v1241_v17 }
 0x133   : > { %v1019_v20 = vpop.f32.mrb[32].mxu1  ;;  %1413 = vmatprep.subr.bf16.mxu1 %v1273_v18  ;;  %v669_v21 = vpop.f32.mrb[33].mxu0  ;;  %1341 = vmatpush1.bf16.msra.mxu0 %v1240_v15  ;;  %v1130_v25 = vmax.f32 %v667_v19, 0.0 }
 0x134   : > { %v1021_v22 = vpop.f32.mrb[33].mxu1  ;;  %1414 = vmatpush1.bf16.msra.mxu1 %v1272_v16  ;;  %v671_v23 = vpop.f32.mrb[34].mxu0  ;;  %v1194_v26 = vmax.f32 %v1019_v20, 0.0  ;;  %v1131_v31 = vmax.f32 %v669_v21, 0.0 }
 0x135   : > { %v1023_v24 = vpop.f32.mrb[34].mxu1  ;;  %v1132_v27 = vmax.f32 %v671_v23, 0.0  ;;  %v673_v29 = vpop.f32.mrb[35].mxu0  ;;  %v1195_v32 = vmax.f32 %v1021_v22, 0.0 }
 0x136   : > { %v1196_v28 = vmax.f32 %v1023_v24, 0.0  ;;  %v1025_v30 = vpop.f32.mrb[35].mxu1  ;;  %v1133_v33 = vmax.f32 %v673_v29, 0.0 }
 0x137   : > { %v1197_v34 = vmax.f32 %v1025_v30, 0.0  ;;  %v1242_v35 = vpack.c.bf16 %v1132_v27, %v1130_v25 }
 0x138   : > { %v1274_v36 = vpack.c.bf16 %v1196_v28, %v1194_v26  ;;  %v1243_v37 = vpack.c.bf16 %v1133_v33, %v1131_v31 }
 0x139   : > { %v1275_v38 = vpack.c.bf16 %v1197_v34, %v1195_v32 }
 0x13a   : > { %v677_v39 = vpop.f32.mrb[36].mxu0  ;;  %1342 = vmatprep.subr.bf16.mxu0 %v1243_v37 }
 0x13b   : > { %v1029_v40 = vpop.f32.mrb[36].mxu1  ;;  %1415 = vmatprep.subr.bf16.mxu1 %v1275_v38  ;;  %v679_v41 = vpop.f32.mrb[37].mxu0  ;;  %1343 = vmatpush1.bf16.msra.mxu0 %v1242_v35  ;;  %v1134_v45 = vmax.f32 %v677_v39, 0.0 }
 0x13c   : > { %v1031_v42 = vpop.f32.mrb[37].mxu1  ;;  %1416 = vmatpush1.bf16.msra.mxu1 %v1274_v36  ;;  %v681_v43 = vpop.f32.mrb[38].mxu0  ;;  %v1198_v46 = vmax.f32 %v1029_v40, 0.0  ;;  %v1135_v51 = vmax.f32 %v679_v41, 0.0 }
 0x13d   : > { %v1033_v44 = vpop.f32.mrb[38].mxu1  ;;  %v1136_v47 = vmax.f32 %v681_v43, 0.0  ;;  %v683_v49 = vpop.f32.mrb[39].mxu0  ;;  %v1199_v52 = vmax.f32 %v1031_v42, 0.0 }
 0x13e   : > { %v1200_v48 = vmax.f32 %v1033_v44, 0.0  ;;  %v1035_v50 = vpop.f32.mrb[39].mxu1  ;;  %v1137_v53 = vmax.f32 %v683_v49, 0.0 }
 0x13f   : > { %v1201_v54 = vmax.f32 %v1035_v50, 0.0  ;;  %v1244_v55 = vpack.c.bf16 %v1136_v47, %v1134_v45 }
 0x140   : > { %v1276_v56 = vpack.c.bf16 %v1200_v48, %v1198_v46  ;;  %v1245_v57 = vpack.c.bf16 %v1137_v53, %v1135_v51 }
 0x141   : > { %v1277_v58 = vpack.c.bf16 %v1201_v54, %v1199_v52 }
 0x142   : > { %v687_v59 = vpop.f32.mrb[40].mxu0  ;;  %1344 = vmatprep.subr.bf16.mxu0 %v1245_v57 }
 0x143   : > { %v1039_v60 = vpop.f32.mrb[40].mxu1  ;;  %1417 = vmatprep.subr.bf16.mxu1 %v1277_v58  ;;  %v689_v61 = vpop.f32.mrb[41].mxu0  ;;  %1345 = vmatpush1.bf16.msra.mxu0 %v1244_v55  ;;  %v1138_v1 = vmax.f32 %v687_v59, 0.0 }
 0x144   : > { %v1041_v62 = vpop.f32.mrb[41].mxu1  ;;  %1418 = vmatpush1.bf16.msra.mxu1 %v1276_v56  ;;  %v691_v63 = vpop.f32.mrb[42].mxu0  ;;  %v1202_v2 = vmax.f32 %v1039_v60, 0.0  ;;  %v1139_v7 = vmax.f32 %v689_v61, 0.0 }
 0x145   : > { %v1043_v0 = vpop.f32.mrb[42].mxu1  ;;  %v1140_v3 = vmax.f32 %v691_v63, 0.0  ;;  %v693_v5 = vpop.f32.mrb[43].mxu0  ;;  %v1203_v8 = vmax.f32 %v1041_v62, 0.0 }
 0x146   : > { %v1204_v4 = vmax.f32 %v1043_v0, 0.0  ;;  %v1045_v6 = vpop.f32.mrb[43].mxu1  ;;  %v1141_v9 = vmax.f32 %v693_v5, 0.0 }
 0x147   : > { %v1205_v10 = vmax.f32 %v1045_v6, 0.0  ;;  %v1246_v11 = vpack.c.bf16 %v1140_v3, %v1138_v1 }
 0x148   : > { %v1278_v12 = vpack.c.bf16 %v1204_v4, %v1202_v2  ;;  %v1247_v13 = vpack.c.bf16 %v1141_v9, %v1139_v7 }
 0x149   : > { %v1279_v14 = vpack.c.bf16 %v1205_v10, %v1203_v8 }
 0x14a   : > { %v697_v15 = vpop.f32.mrb[44].mxu0  ;;  %1346 = vmatprep.subr.bf16.mxu0 %v1247_v13 }
 0x14b   : > { %v1049_v16 = vpop.f32.mrb[44].mxu1  ;;  %1419 = vmatprep.subr.bf16.mxu1 %v1279_v14  ;;  %v699_v17 = vpop.f32.mrb[45].mxu0  ;;  %1347 = vmatpush1.bf16.msra.mxu0 %v1246_v11  ;;  %v1142_v21 = vmax.f32 %v697_v15, 0.0 }
 0x14c   : > { %v1051_v18 = vpop.f32.mrb[45].mxu1  ;;  %1420 = vmatpush1.bf16.msra.mxu1 %v1278_v12  ;;  %v701_v19 = vpop.f32.mrb[46].mxu0  ;;  %v1206_v22 = vmax.f32 %v1049_v16, 0.0  ;;  %v1143_v27 = vmax.f32 %v699_v17, 0.0 }
 0x14d   : > { %v1053_v20 = vpop.f32.mrb[46].mxu1  ;;  %v1144_v23 = vmax.f32 %v701_v19, 0.0  ;;  %v703_v25 = vpop.f32.mrb[47].mxu0  ;;  %v1207_v28 = vmax.f32 %v1051_v18, 0.0 }
 0x14e   : > { %v1208_v24 = vmax.f32 %v1053_v20, 0.0  ;;  %v1055_v26 = vpop.f32.mrb[47].mxu1  ;;  %v1145_v29 = vmax.f32 %v703_v25, 0.0 }
 0x14f   : > { %v1209_v30 = vmax.f32 %v1055_v26, 0.0  ;;  %v1248_v31 = vpack.c.bf16 %v1144_v23, %v1142_v21 }
 0x150   : > { %v1280_v32 = vpack.c.bf16 %v1208_v24, %v1206_v22  ;;  %v1249_v33 = vpack.c.bf16 %v1145_v29, %v1143_v27 }
 0x151   : > { %v1281_v34 = vpack.c.bf16 %v1209_v30, %v1207_v28 }
 0x152   : > { %v707_v35 = vpop.f32.mrb[48].mxu0  ;;  %1348 = vmatprep.subr.bf16.mxu0 %v1249_v33 }
 0x153   : > { %v1059_v36 = vpop.f32.mrb[48].mxu1  ;;  %1421 = vmatprep.subr.bf16.mxu1 %v1281_v34  ;;  %v709_v37 = vpop.f32.mrb[49].mxu0  ;;  %1349 = vmatpush1.bf16.msra.mxu0 %v1248_v31  ;;  %v1146_v41 = vmax.f32 %v707_v35, 0.0 }
 0x154   : > { %v1061_v38 = vpop.f32.mrb[49].mxu1  ;;  %1422 = vmatpush1.bf16.msra.mxu1 %v1280_v32  ;;  %v711_v39 = vpop.f32.mrb[50].mxu0  ;;  %v1210_v42 = vmax.f32 %v1059_v36, 0.0  ;;  %v1147_v47 = vmax.f32 %v709_v37, 0.0 }
 0x155   : > { %v1063_v40 = vpop.f32.mrb[50].mxu1  ;;  %v1148_v43 = vmax.f32 %v711_v39, 0.0  ;;  %v713_v45 = vpop.f32.mrb[51].mxu0  ;;  %v1211_v48 = vmax.f32 %v1061_v38, 0.0 }
 0x156   : > { %v1212_v44 = vmax.f32 %v1063_v40, 0.0  ;;  %v1065_v46 = vpop.f32.mrb[51].mxu1  ;;  %v1149_v49 = vmax.f32 %v713_v45, 0.0 }
 0x157   : > { %v1213_v50 = vmax.f32 %v1065_v46, 0.0  ;;  %v1250_v51 = vpack.c.bf16 %v1148_v43, %v1146_v41 }
 0x158   : > { %v1282_v52 = vpack.c.bf16 %v1212_v44, %v1210_v42  ;;  %v1251_v53 = vpack.c.bf16 %v1149_v49, %v1147_v47 }
 0x159   : > { %v1283_v54 = vpack.c.bf16 %v1213_v50, %v1211_v48 }
 0x15a   : > { %v717_v55 = vpop.f32.mrb[52].mxu0  ;;  %1350 = vmatprep.subr.bf16.mxu0 %v1251_v53  ;;  %v1884_v53 = vld [vmem:[%s2067_s27 + $0x14] ss:$8 sps:$4 sm:$0xff]  }
 0x15b   : > { %v1069_v56 = vpop.f32.mrb[52].mxu1  ;;  %1423 = vmatprep.subr.bf16.mxu1 %v1283_v54  ;;  %v719_v57 = vpop.f32.mrb[53].mxu0  ;;  %1351 = vmatpush1.bf16.msra.mxu0 %v1250_v51  ;;  %v1150_v61 = vmax.f32 %v717_v55, 0.0  ;;  %v1878_v51 = vld [vmem:[%s2067_s27] ss:$8 sps:$4 sm:$0xff]  }
 0x15c   : > { %v1071_v58 = vpop.f32.mrb[53].mxu1  ;;  %1424 = vmatpush1.bf16.msra.mxu1 %v1282_v52  ;;  %v721_v59 = vpop.f32.mrb[54].mxu0  ;;  %v1214_v62 = vmax.f32 %v1069_v56, 0.0  ;;  %v1151_v3 = vmax.f32 %v719_v57, 0.0  ;;  %v1881_v52 = vld [vmem:[%s2067_s27 + $0x20] ss:$8 sps:$4 sm:$0xff]  }
 0x15d   : > { %v1073_v60 = vpop.f32.mrb[54].mxu1  ;;  %v1152_v63 = vmax.f32 %v721_v59, 0.0  ;;  %v723_v1 = vpop.f32.mrb[55].mxu0  ;;  %v1215_v4 = vmax.f32 %v1071_v58, 0.0  ;;  %v1886_v54 = vld [vmem:[%s2067_s27 + $0x34] ss:$8 sps:$4 sm:$0xff]  }
 0x15e   : > { %v1216_v0 = vmax.f32 %v1073_v60, 0.0  ;;  %v1075_v2 = vpop.f32.mrb[55].mxu1  ;;  %v1153_v5 = vmax.f32 %v723_v1, 0.0  ;;  %v1888_v55 = vld [vmem:[%s2067_s27 + $0x10] ss:$8 sps:$4 sm:$0xff]  }
 0x15f   : > { %v1217_v6 = vmax.f32 %v1075_v2, 0.0  ;;  %v1252_v7 = vpack.c.bf16 %v1152_v63, %v1150_v61  ;;  %v1889_v56 = vld [vmem:[%s2067_s27 + $0x30] ss:$8 sps:$4 sm:$0xff]  }
 0x160   : > { %v1284_v8 = vpack.c.bf16 %v1216_v0, %v1214_v62  ;;  %v1253_v9 = vpack.c.bf16 %v1153_v5, %v1151_v3 }
 0x161   : > { %v1285_v10 = vpack.c.bf16 %v1217_v6, %v1215_v4 }
 0x162   : > { %v727_v11 = vpop.f32.mrb[56].mxu0  ;;  %1352 = vmatprep.subr.bf16.mxu0 %v1253_v9 }
 0x163   : > { %v1079_v12 = vpop.f32.mrb[56].mxu1  ;;  %1425 = vmatprep.subr.bf16.mxu1 %v1285_v10  ;;  %v729_v13 = vpop.f32.mrb[57].mxu0  ;;  %1353 = vmatpush1.bf16.msra.mxu0 %v1252_v7  ;;  %v1154_v17 = vmax.f32 %v727_v11, 0.0 }
 0x164   : > { %v1081_v14 = vpop.f32.mrb[57].mxu1  ;;  %1426 = vmatpush1.bf16.msra.mxu1 %v1284_v8  ;;  %v731_v15 = vpop.f32.mrb[58].mxu0  ;;  %v1218_v18 = vmax.f32 %v1079_v12, 0.0  ;;  %v1155_v23 = vmax.f32 %v729_v13, 0.0 }
 0x165   : > { %v1083_v16 = vpop.f32.mrb[58].mxu1  ;;  %v1156_v19 = vmax.f32 %v731_v15, 0.0  ;;  %v733_v21 = vpop.f32.mrb[59].mxu0  ;;  %v1219_v24 = vmax.f32 %v1081_v14, 0.0 }
 0x166   : > { %v1220_v20 = vmax.f32 %v1083_v16, 0.0  ;;  %v1085_v22 = vpop.f32.mrb[59].mxu1  ;;  %v1157_v25 = vmax.f32 %v733_v21, 0.0 }
 0x167   : > { %v1221_v26 = vmax.f32 %v1085_v22, 0.0  ;;  %v1254_v27 = vpack.c.bf16 %v1156_v19, %v1154_v17 }
 0x168   : > { %v1286_v28 = vpack.c.bf16 %v1220_v20, %v1218_v18  ;;  %v1255_v29 = vpack.c.bf16 %v1157_v25, %v1155_v23 }
 0x169   : > { %v1287_v30 = vpack.c.bf16 %v1221_v26, %v1219_v24 }
 0x16a   : > { %v737_v31 = vpop.f32.mrb[60].mxu0  ;;  %1354 = vmatprep.subr.bf16.mxu0 %v1255_v29 }
 0x16b   : > { %v1089_v32 = vpop.f32.mrb[60].mxu1  ;;  %1427 = vmatprep.subr.bf16.mxu1 %v1287_v30  ;;  %v739_v33 = vpop.f32.mrb[61].mxu0  ;;  %1355 = vmatpush1.bf16.msra.mxu0 %v1254_v27  ;;  %v1158_v37 = vmax.f32 %v737_v31, 0.0 }
 0x16c   : > { %v1091_v34 = vpop.f32.mrb[61].mxu1  ;;  %1428 = vmatpush1.bf16.msra.mxu1 %v1286_v28  ;;  %v741_v35 = vpop.f32.mrb[62].mxu0  ;;  %v1222_v38 = vmax.f32 %v1089_v32, 0.0  ;;  %v1159_v43 = vmax.f32 %v739_v33, 0.0 }
 0x16d   : > { %v1093_v36 = vpop.f32.mrb[62].mxu1  ;;  %v1160_v39 = vmax.f32 %v741_v35, 0.0  ;;  %v743_v41 = vpop.f32.mrb[63].mxu0  ;;  %v1223_v44 = vmax.f32 %v1091_v34, 0.0 }
 0x16e   : > { %v1224_v40 = vmax.f32 %v1093_v36, 0.0  ;;  %v1095_v42 = vpop.f32.mrb[63].mxu1  ;;  %v1161_v45 = vmax.f32 %v743_v41, 0.0 }
 0x16f   : > { %v1225_v46 = vmax.f32 %v1095_v42, 0.0  ;;  %v1256_v47 = vpack.c.bf16 %v1160_v39, %v1158_v37 }
 0x170   : > { %v1288_v48 = vpack.c.bf16 %v1224_v40, %v1222_v38  ;;  %v1257_v49 = vpack.c.bf16 %v1161_v45, %v1159_v43 }
 0x171   : > { %v1289_v50 = vpack.c.bf16 %v1225_v46, %v1223_v44 }
 0x172   : > { %1356 = vmatprep.subr.bf16.mxu0 %v1257_v49 }
 0x173   : > { %1429 = vmatprep.subr.bf16.mxu1 %v1289_v50  ;;  %1357 = vmatpush1.bf16.msra.mxu0 %v1256_v47 }
 0x174   : > { %1430 = vmatpush1.bf16.msra.mxu1 %v1288_v48 }
 0x176   : > { %1359 = vmatmul.mubr.bf16.vlgmr.msra.gmra.mrb[64].mxu0 %v1878_v51 }
 0x177   : > { %1432 = vmatmul.mubr.bf16.vlgmr.msra.gmra.mrb[64].mxu1 %v1881_v52  ;;  %1368 = vmatprep.mubr.bf16.mxu0 %v1884_v53 }
 0x178   : > { %1441 = vmatprep.mubr.bf16.mxu1 %v1886_v54 }
 0x17e   : > { %1369 = vmatmul.mubr.bf16.gmra.mrb[68].mxu0 %v1888_v55 }
 0x17f   : > { %1442 = vmatmul.mubr.bf16.gmra.mrb[68].mxu1 %v1889_v56 }
 0x249   : > { %v1360_v57 = vpop.f32.mrb[64].mxu0 }
 0x24a   : > { %v1433_v58 = vpop.f32.mrb[64].mxu1  ;;  %v1362_v59 = vpop.f32.mrb[65].mxu0 }
 0x24b   : > { %v1435_v60 = vpop.f32.mrb[65].mxu1  ;;  %v1796_v61 = vpack.c.bf16 %v1362_v59, %v1360_v57  ;;  %v1364_v63 = vpop.f32.mrb[66].mxu0 }
 0x24c   : > { %v1800_v62 = vpack.c.bf16 %v1435_v60, %v1433_v58  ;;  %v1437_v0 = vpop.f32.mrb[66].mxu1  ;;  %v1366_v1 = vpop.f32.mrb[67].mxu0 }
 0x24d   : > { %v1439_v2 = vpop.f32.mrb[67].mxu1  ;;  %1551 = vst [vmem:[%s287_s30] sm:$0xff] %v1796_v61  ;;  %v1797_v3 = vpack.c.bf16 %v1366_v1, %v1364_v63 }
 0x24e   : > { %1555 = vst [vmem:[%s287_s30 + $0x20] sm:$0xff] %v1800_v62  ;;  %v1801_v4 = vpack.c.bf16 %v1439_v2, %v1437_v0 }
 0x24f   : > { %1552 = vst [vmem:[%s287_s30 + $0x8] sm:$0xff] %v1797_v3 }
 0x250   : > { %1556 = vst [vmem:[%s287_s30 + $0x28] sm:$0xff] %v1801_v4 }
 0x251   : > { %v1370_v5 = vpop.f32.mrb[68].mxu0 }
 0x252   : > { %v1443_v6 = vpop.f32.mrb[68].mxu1  ;;  %v1372_v7 = vpop.f32.mrb[69].mxu0 }
 0x253   : > { %v1445_v8 = vpop.f32.mrb[69].mxu1  ;;  %v1798_v9 = vpack.c.bf16 %v1372_v7, %v1370_v5  ;;  %v1374_v11 = vpop.f32.mrb[70].mxu0 }
 0x254   : > { %v1802_v10 = vpack.c.bf16 %v1445_v8, %v1443_v6  ;;  %v1447_v12 = vpop.f32.mrb[70].mxu1  ;;  %v1376_v13 = vpop.f32.mrb[71].mxu0 }
 0x255   : > { %v1449_v14 = vpop.f32.mrb[71].mxu1  ;;  %1553 = vst [vmem:[%s287_s30 + $0x10] sm:$0xff] %v1798_v9  ;;  %v1799_v15 = vpack.c.bf16 %v1376_v13, %v1374_v11 }
 0x256   : > { %1557 = vst [vmem:[%s287_s30 + $0x30] sm:$0xff] %v1802_v10  ;;  %v1803_v16 = vpack.c.bf16 %v1449_v14, %v1447_v12 }
 0x257   : > { %1554 = vst [vmem:[%s287_s30 + $0x18] sm:$0xff] %v1799_v15 }
 0x258   : > { %1558 = vst [vmem:[%s287_s30 + $0x38] sm:$0xff] %v1803_v16 }
 0x259 PF: > { %s13_s14 = sadd.s32 1, %s1912_s14   ;;  %s2095_s12 = smov %s1908_s13 }
 0x25a   : > { %p10_p5 = scmp.ge.s32.totalorder %s13_s14, 4   ;;  %s2096_s13 = smov %s2098_s15 }
 0x25c   :  { %12 = sbr.rel (!%p10_p5) target bundleno = 2 (0x2), region = 76 }

</bundles_post_ra>
